<compile_context>
chip_gen: v6e
topology: v6e:2x2x1
jax: 0.10.0
libtpu: 0.0.40
codegen_flags: <defaults>
</compile_context>

<pallas_src>
import math

import jax
import jax.numpy as jnp
from jax.experimental import pallas as pl
from jax.experimental.pallas import tpu as pltpu


_LANES = 128
_ROW_ALIGN = 32                 # valid sublane multiple for f32 (8), bf16 (16), int8 (32)
_CORE_SPLITS = 2                # leading "parallel" grid axis -> both TCs on v7x
_BCE_BYTES_PER_ROW = _LANES * (4 + 1 + 1)      # logits f32 + obs i8 + mask i8
_KL_BYTES_PER_ROW = _LANES * (4 * 4 + 1)       # q/p mean+logvar f32 + kl_mask i8


def _round_up(x, m):
    return ((x + m - 1) // m) * m


def _cdiv(a, b):
    return -(-a // b)


def _vmem_plan():
    """Return (per-step HBM byte budget, vmem_limit_bytes) from physical VMEM."""
    try:
        cap = int(pltpu.get_tpu_info().vmem_capacity_bytes)
    except Exception:
        cap = 64 * 1024 * 1024                      # unknown -> assume v7x (64 MiB)
    if cap >= 96 * 1024 * 1024:                     # v5e / v6e: 128 MiB VMEM
        return 20 * 1024 * 1024, 80 * 1024 * 1024
    return 8 * 1024 * 1024, 40 * 1024 * 1024        # v7x / unknown: 64 MiB VMEM


def _plan_grid(n_bce, n_kl, step_budget):
    """Reduction steps per core-split + per-stream tile rows (lane-packed layout)."""
    rows_bce = _round_up(max(1, _cdiv(n_bce, _LANES)), _ROW_ALIGN)
    rows_kl = _round_up(max(1, _cdiv(n_kl, _LANES)), _ROW_ALIGN)
    bytes_total = rows_bce * _BCE_BYTES_PER_ROW + rows_kl * _KL_BYTES_PER_ROW
    n_steps = max(1, _cdiv(bytes_total, _CORE_SPLITS * step_budget))
    n_blocks = _CORE_SPLITS * n_steps
    tb = _round_up(_cdiv(rows_bce, n_blocks), _ROW_ALIGN)
    tk = _round_up(_cdiv(rows_kl, n_blocks), _ROW_ALIGN)
    return n_steps, tb, tk


def _lane_pack(x, rows, dtype):
    """Flatten to 1-D, cast, zero-pad, reshape to a lane-dense (rows, 128) slab."""
    flat = jnp.ravel(x).astype(dtype)
    pad = rows * _LANES - flat.shape[0]
    if pad:
        flat = jnp.pad(flat, (0, pad))
    return flat.reshape(rows, _LANES)


# ----------------------------------------------------------------------------
# Pallas kernel: masked BCE-with-logits + masked Gaussian KL, gridded reduction.
# Grid = (core_split, step); each core_split emits its own (8,128) partial block.
# ----------------------------------------------------------------------------
def _elbo_kernel(logits_ref, obs_ref, w_ref,
                 qm_ref, qlv_ref, pm_ref, plv_ref, klm_ref,
                 out_ref,
                 bce_acc, w_acc, kl_acc, klm_acc):
    j = pl.program_id(1)

    @pl.when(j == 0)
    def _init():
        out_ref[...] = jnp.zeros_like(out_ref)
        bce_acc[...] = jnp.zeros_like(bce_acc)
        w_acc[...] = jnp.zeros_like(w_acc)
        kl_acc[...] = jnp.zeros_like(kl_acc)
        klm_acc[...] = jnp.zeros_like(klm_acc)

    # --- masked binary-cross-entropy with logits (numerically stable) --------
    x = logits_ref[...]                           # f32 (tb, 128)
    y = obs_ref[...].astype(jnp.float32)          # int8 -> f32 ({0,1} exact)
    w = w_ref[...].astype(jnp.float32)            # int8 -> f32 ({0,1} exact)
    e = jnp.exp(-jnp.abs(x))                      # e in (0, 1]
    # precision-safe log1p(e): for e <= 1e-4 the 3-term series is exact to f32
    # (fixes the large-|x| regime flagged in review); otherwise naive log(1+e)
    # is within ~1e-7 absolute.  Uses only ops with guaranteed Mosaic lowering.
    softplus = jnp.where(e > 1e-4,
                         jnp.log(1.0 + e),
                         e * (1.0 - e * (0.5 - e * (1.0 / 3.0))))
    bce = jnp.maximum(x, 0.0) - x * y + softplus
    # per-step sublane reduce to (1,128) lane partials; XLU has slack (HBM-bound)
    bce_acc[...] += jnp.sum(bce * w, axis=0, keepdims=True)
    w_acc[...] += jnp.sum(w, axis=0, keepdims=True)

    # --- masked elementwise Gaussian KL( N(qm, e^qlv) || N(pm, e^plv) ) -------
    qm = qm_ref[...]
    qlv = qlv_ref[...]
    pm = pm_ref[...]
    plv = plv_ref[...]
    klm = klm_ref[...].astype(jnp.float32)        # broadcast timestep mask, {0,1}
    kl = 0.5 * (plv - qlv + (jnp.exp(qlv) + (qm - pm) ** 2) * jnp.exp(-plv) - 1.0)
    kl_acc[...] += jnp.sum(kl * klm, axis=0, keepdims=True)
    klm_acc[...] += jnp.sum(klm, axis=0, keepdims=True)

    # --- write this core-split's lane partial sums; combine/divide in wrapper --
    @pl.when(j == pl.num_programs(1) - 1)
    def _finalize():
        out_ref[0:1, :] = bce_acc[...]
        out_ref[1:2, :] = w_acc[...]
        out_ref[2:3, :] = kl_acc[...]
        out_ref[3:4, :] = klm_acc[...]
        # rows 4..7 stay zero from _init


@jax.jit
def _elbo_pallas(logits, obs, mask, q_mean, q_logvar, p_mean, p_logvar):
    """logits/obs/mask: (B,T,D_obs); q_*/p_*: (B,T,D_z).  Returns (logp, kl)."""
    d_obs = logits.shape[-1]
    d_z = q_mean.shape[-1]

    step_budget, vmem_limit = _vmem_plan()
    n_steps, tb, tk = _plan_grid(logits.size, q_mean.size, step_budget)
    n_blocks = _CORE_SPLITS * n_steps
    rows_bce = n_blocks * tb
    rows_kl = n_blocks * tk

    # kl_mask == ones_like(q_mean) * mask[:, :, 0:1] (torch semantics; divide by
    # its sum over count*D_z then * latent_dim matches the torch module).  Built
    # here so broadcast + int8 cast + pad fuse into one producing fusion.
    kl_mask = jnp.broadcast_to(mask[..., 0:1], q_mean.shape)

    logits_p = _lane_pack(logits, rows_bce, jnp.float32)
    obs_p = _lane_pack(obs, rows_bce, jnp.int8)       # {0,1} exact, 1 B/elem
    mask_p = _lane_pack(mask, rows_bce, jnp.int8)
    qm_p = _lane_pack(q_mean, rows_kl, jnp.float32)
    qlv_p = _lane_pack(q_logvar, rows_kl, jnp.float32)
    pm_p = _lane_pack(p_mean, rows_kl, jnp.float32)
    plv_p = _lane_pack(p_logvar, rows_kl, jnp.float32)
    klm_p = _lane_pack(kl_mask, rows_kl, jnp.int8)

    def row_map(i, j):                                # core-split i owns a disjoint
        return (i * n_steps + j, 0)                   # contiguous row range

    bce_spec = pl.BlockSpec((tb, _LANES), row_map)
    kl_spec = pl.BlockSpec((tk, _LANES), row_map)

    partials = pl.pallas_call(
        _elbo_kernel,
        out_shape=jax.ShapeDtypeStruct((_CORE_SPLITS * 8, _LANES), jnp.float32),
        grid_spec=pltpu.PrefetchScalarGridSpec(
            num_scalar_prefetch=0,
            grid=(_CORE_SPLITS, n_steps),
            in_specs=[bce_spec, bce_spec, bce_spec,
                      kl_spec, kl_spec, kl_spec, kl_spec, kl_spec],
            out_specs=pl.BlockSpec((8, _LANES), lambda i, j: (i, 0)),
            scratch_shapes=[pltpu.VMEM((1, _LANES), jnp.float32)] * 4,
        ),
        compiler_params=pltpu.CompilerParams(
            dimension_semantics=("parallel", "arbitrary"),
            vmem_limit_bytes=vmem_limit,
        ),
    )(logits_p, obs_p, mask_p, qm_p, qlv_p, pm_p, plv_p, klm_p)

    p = partials.reshape(_CORE_SPLITS, 8, _LANES)
    bce_sum = jnp.sum(p[:, 0, :])
    w_sum = jnp.sum(p[:, 1, :])
    kl_sum = jnp.sum(p[:, 2, :])
    klm_sum = jnp.sum(p[:, 3, :])
    logp = bce_sum / w_sum * d_obs
    kl = kl_sum / klm_sum * d_z
    return logp, kl

    # TODO(synk): fusing the emission matmul (z @ W_emi + b) into the BCE side
    # would cut the logits stream, but with D_obs=16 << 128 lanes the VPU/EUP
    # lane density drops ~8x; left to XLA until a multi-timestep row packing
    # for the matmul output is implemented.


def _elbo_reference(logits, obs, mask, qm, qlv, pm, plv):
    """Plain-JAX reference for correctness checking."""
    bce = jnp.maximum(logits, 0.0) - logits * obs + jnp.log1p(jnp.exp(-jnp.abs(logits)))
    logp = jnp.sum(bce * mask) / jnp.sum(mask) * logits.shape[-1]
    kl_mask = jnp.broadcast_to(mask[..., 0:1], qm.shape)
    kl = 0.5 * (plv - qlv + (jnp.exp(qlv) + (qm - pm) ** 2) * jnp.exp(-plv) - 1.0)
    klv = jnp.sum(kl * kl_mask) / jnp.sum(kl_mask) * qm.shape[-1]
    return logp, klv


# ----------------------------------------------------------------------------
# Synthetic state-space "model" — plain-JAX glue (mirrors the torch sub-models).
# ----------------------------------------------------------------------------
class _Sampler:
    """Holds a PRNG key and yields a fresh subkey per call (torch-like fresh randn)."""

    def __init__(self, key):
        self._key = key

    def next_key(self):
        self._key, sub = jax.random.split(self._key)
        return sub


def _linear_init(key, fan_in, fan_out):
    kw, kb = jax.random.split(key)
    scale = 1.0 / math.sqrt(fan_in)
    w = jax.random.uniform(kw, (fan_in, fan_out), jnp.float32, -scale, scale)
    b = jax.random.uniform(kb, (fan_out,), jnp.float32, -scale, scale)
    return w, b


def make_model(key, obs_dim, latent_dim, hidden_dim):
    ks = jax.random.split(key, 7)
    params = {
        "inf_h": _linear_init(ks[0], obs_dim, hidden_dim),
        "inf_m": _linear_init(ks[1], hidden_dim, latent_dim),
        "inf_v": _linear_init(ks[2], hidden_dim, latent_dim),
        "emi": _linear_init(ks[3], latent_dim, obs_dim),
        "trn_m": _linear_init(ks[4], latent_dim, latent_dim),
        "trn_v": _linear_init(ks[5], latent_dim, latent_dim),
    }
    sampler = _Sampler(ks[6])

    def inference_model(obs):
        h = jnp.tanh(obs @ params["inf_h"][0] + params["inf_h"][1])
        q_mean = h @ params["inf_m"][0] + params["inf_m"][1]
        q_logvar = h @ params["inf_v"][0] + params["inf_v"][1]
        eps = jax.random.normal(sampler.next_key(), q_mean.shape, jnp.float32)
        z = q_mean + jnp.exp(0.5 * q_logvar) * eps
        return (q_mean, q_logvar), z

    def emission_model(z):
        return z @ params["emi"][0] + params["emi"][1]  # logits

    def transition_model(z):
        p_mean = z @ params["trn_m"][0] + params["trn_m"][1]
        p_logvar = z @ params["trn_v"][0] + params["trn_v"][1]
        return (p_mean, p_logvar)

    return {"inference_model": inference_model,
            "emission_model": emission_model,
            "transition_model": transition_model}


def impute_transition_distribution(dist, mean0, logvar0):
    # shift the transition prediction by one step; t=0 prior is N(mean0, exp(logvar0))
    m, lv = dist
    m = jnp.concatenate([jnp.full_like(m[:, :1, :], mean0), m[:, :-1, :]], axis=1)
    lv = jnp.concatenate([jnp.full_like(lv[:, :1, :], logvar0), lv[:, :-1, :]], axis=1)
    return (m, lv)


# ----------------------------------------------------------------------------
# DMMBinaryELBO (JAX / Pallas version)
# ----------------------------------------------------------------------------
class DMMBinaryELBO:
    def __init__(self, annealing_params):
        self.annealing_params = annealing_params

    def forward(self, model, data, epoch=0):
        observation_gt = data[0]          # (B, T, D_obs) float32 in {0,1}
        mask = data[1]                    # (B, T, D_obs) float32 in {0,1}

        # TODO(synk): the forward itself is left un-jitted because the synthetic
        # inference model mutates a Python-side PRNG key; the heavy loss path
        # (_elbo_pallas, incl. packing) is jitted.  Thread keys explicitly to
        # jit the whole forward.
        latent_distribution, latent_samples = model["inference_model"](observation_gt)
        emission_logits = model["emission_model"](latent_samples)
        transition_distribution = model["transition_model"](latent_samples)
        transition_distribution = impute_transition_distribution(
            transition_distribution, 0.0, 0.0)

        q_mean, q_logvar = latent_distribution
        p_mean, p_logvar = transition_distribution

        logp_obs_loss, kl_loss = _elbo_pallas(
            emission_logits.astype(jnp.float32),
            observation_gt, mask,
            q_mean.astype(jnp.float32), q_logvar.astype(jnp.float32),
            p_mean.astype(jnp.float32), p_logvar.astype(jnp.float32))

        annealing_factor = 1.0
        if self.annealing_params["enabled"]:
            if epoch < self.annealing_params["warm_up"]:
                annealing_factor = 0.0
            else:
                annealing_factor = min(
                    (epoch - self.annealing_params["warm_up"])
                    / self.annealing_params["n_epochs_for_full"], 1.0)

        total_loss = logp_obs_loss + annealing_factor * kl_loss
        # Return JAX scalars (no .item()/float() per step -> no device->host sync);
        # materialize them only when actually logging.
        logging = {
            "Training loss": total_loss,
            "log_p observation loss": logp_obs_loss,
            "KL loss": kl_loss,
            "logp + kl loss": logp_obs_loss + kl_loss,
            "annealing_factor": annealing_factor,
            "epoch": epoch,
        }
        return total_loss, logging


# ----------------------------------------------------------------------------
if __name__ == "__main__":
    B, T, D_obs, D_z, H = 2, 8, 16, 8, 32

    key = jax.random.PRNGKey(0)
    k_model, k_obs, k_mask = jax.random.split(key, 3)

    model = make_model(k_model, D_obs, D_z, H)

    observation_gt = jax.random.bernoulli(k_obs, 0.5, (B, T, D_obs)).astype(jnp.float32)
    valid_t = (jax.random.uniform(k_mask, (B, T, 1)) > 0.2).astype(jnp.float32)
    valid_t = valid_t.at[:, 0:1, :].set(1.0)   # ensure at least one valid step
    mask = jnp.broadcast_to(valid_t, (B, T, D_obs)).astype(jnp.float32)

    # --- correctness probe: Pallas kernel vs. plain-JAX reference ------------
    kq = jax.random.split(jax.random.PRNGKey(1), 7)
    Bc, Tc = 3, 11
    lg = jax.random.normal(kq[0], (Bc, Tc, D_obs), jnp.float32)
    ob = jax.random.bernoulli(kq[1], 0.5, (Bc, Tc, D_obs)).astype(jnp.float32)
    vt = (jax.random.uniform(kq[2], (Bc, Tc, 1)) > 0.3).astype(jnp.float32)
    vt = vt.at[:, 0:1, :].set(1.0)
    mk = jnp.broadcast_to(vt, (Bc, Tc, D_obs))
    qm = jax.random.normal(kq[3], (Bc, Tc, D_z), jnp.float32)
    qlv = 0.1 * jax.random.normal(kq[4], (Bc, Tc, D_z), jnp.float32)
    pm = jax.random.normal(kq[5], (Bc, Tc, D_z), jnp.float32)
    plv = 0.1 * jax.random.normal(kq[6], (Bc, Tc, D_z), jnp.float32)
    got_logp, got_kl = _elbo_pallas(lg, ob, mk, qm, qlv, pm, plv)
    ref_logp, ref_kl = _elbo_reference(lg, ob, mk, qm, qlv, pm, plv)
    jax.block_until_ready(got_logp)
    assert abs(float(got_logp) - float(ref_logp)) <= 1e-3 * (1.0 + abs(float(ref_logp)))
    assert abs(float(got_kl) - float(ref_kl)) <= 1e-3 * (1.0 + abs(float(ref_kl)))

    # --- full forward pass ----------------------------------------------------
    loss_fn = DMMBinaryELBO({"enabled": True, "warm_up": 0, "n_epochs_for_full": 100})
    total_loss, logging = loss_fn.forward(model, [observation_gt, mask], epoch=10)
    jax.block_until_ready(total_loss)

    # TODO(synk): `gaussian_kl` / `impute_transition_distribution` sources were not
    # provided; standard DMM (mean, log-variance) conventions are assumed.
    print("KERNEL_OK")
</pallas_src>

<mosaic_0001>
module attributes {stable_mosaic.version = 11 : i64} {
  func.func @_elbo_kernel(%arg0: i32, %arg1: i32, %arg2: memref<32x128xf32, #tpu.memory_space<vmem>>, %arg3: memref<32x128xi8, #tpu.memory_space<vmem>>, %arg4: memref<32x128xi8, #tpu.memory_space<vmem>>, %arg5: memref<32x128xf32, #tpu.memory_space<vmem>>, %arg6: memref<32x128xf32, #tpu.memory_space<vmem>>, %arg7: memref<32x128xf32, #tpu.memory_space<vmem>>, %arg8: memref<32x128xf32, #tpu.memory_space<vmem>>, %arg9: memref<32x128xi8, #tpu.memory_space<vmem>>, %arg10: memref<8x128xf32, #tpu.memory_space<vmem>>, %arg11: memref<1x128xf32, #tpu.memory_space<vmem>>, %arg12: memref<1x128xf32, #tpu.memory_space<vmem>>, %arg13: memref<1x128xf32, #tpu.memory_space<vmem>>, %arg14: memref<1x128xf32, #tpu.memory_space<vmem>>) attributes {dimension_semantics = [#tpu.dimension_semantics<parallel>, #tpu.dimension_semantics<arbitrary>], iteration_bounds = array<i64: 2, 1>, scalar_prefetch = 0 : i64, scratch_operands = 4 : i64, tpu.core_type = #tpu.core_type<tc>, window_params = [{transform_indices = @transform_0, window_bounds = array<i64: 32, 128>}, {transform_indices = @transform_1, window_bounds = array<i64: 32, 128>}, {transform_indices = @transform_2, window_bounds = array<i64: 32, 128>}, {transform_indices = @transform_3, window_bounds = array<i64: 32, 128>}, {transform_indices = @transform_4, window_bounds = array<i64: 32, 128>}, {transform_indices = @transform_5, window_bounds = array<i64: 32, 128>}, {transform_indices = @transform_6, window_bounds = array<i64: 32, 128>}, {transform_indices = @transform_7, window_bounds = array<i64: 32, 128>}, {transform_indices = @transform_8, window_bounds = array<i64: 8, 128>}]} {
    %c0_i32 = arith.constant 0 : i32
    %0 = arith.cmpi eq, %arg1, %c0_i32 : i32
    %1 = arith.extui %0 : i1 to i32
    %c0_i32_0 = arith.constant 0 : i32
    %2 = arith.cmpi ne, %1, %c0_i32_0 : i32
    scf.if %2 {
      %cst_47 = arith.constant 0.000000e+00 : f32
      %76 = vector.broadcast %cst_47 : f32 to vector<8x128xf32>
      %c0_48 = arith.constant 0 : index
      %c0_49 = arith.constant 0 : index
      %77 = vector.load %arg10[%c0_48, %c0_49] : memref<8x128xf32, #tpu.memory_space<vmem>>, vector<8x128xf32>
      tpu.vector_store %arg10[%c0_48, %c0_49], %76 {strides = array<i32>} : memref<8x128xf32, #tpu.memory_space<vmem>>, vector<8x128xf32>,
      %cst_50 = arith.constant 0.000000e+00 : f32
      %78 = vector.broadcast %cst_50 : f32 to vector<1x128xf32>
      %c0_51 = arith.constant 0 : index
      %c0_52 = arith.constant 0 : index
      %79 = vector.load %arg11[%c0_51, %c0_52] : memref<1x128xf32, #tpu.memory_space<vmem>>, vector<1x128xf32>
      tpu.vector_store %arg11[%c0_51, %c0_52], %78 {strides = array<i32>} : memref<1x128xf32, #tpu.memory_space<vmem>>, vector<1x128xf32>,
      %cst_53 = arith.constant 0.000000e+00 : f32
      %80 = vector.broadcast %cst_53 : f32 to vector<1x128xf32>
      %c0_54 = arith.constant 0 : index
      %c0_55 = arith.constant 0 : index
      %81 = vector.load %arg12[%c0_54, %c0_55] : memref<1x128xf32, #tpu.memory_space<vmem>>, vector<1x128xf32>
      tpu.vector_store %arg12[%c0_54, %c0_55], %80 {strides = array<i32>} : memref<1x128xf32, #tpu.memory_space<vmem>>, vector<1x128xf32>,
      %cst_56 = arith.constant 0.000000e+00 : f32
      %82 = vector.broadcast %cst_56 : f32 to vector<1x128xf32>
      %c0_57 = arith.constant 0 : index
      %c0_58 = arith.constant 0 : index
      %83 = vector.load %arg13[%c0_57, %c0_58] : memref<1x128xf32, #tpu.memory_space<vmem>>, vector<1x128xf32>
      tpu.vector_store %arg13[%c0_57, %c0_58], %82 {strides = array<i32>} : memref<1x128xf32, #tpu.memory_space<vmem>>, vector<1x128xf32>,
      %cst_59 = arith.constant 0.000000e+00 : f32
      %84 = vector.broadcast %cst_59 : f32 to vector<1x128xf32>
      %c0_60 = arith.constant 0 : index
      %c0_61 = arith.constant 0 : index
      %85 = vector.load %arg14[%c0_60, %c0_61] : memref<1x128xf32, #tpu.memory_space<vmem>>, vector<1x128xf32>
      tpu.vector_store %arg14[%c0_60, %c0_61], %84 {strides = array<i32>} : memref<1x128xf32, #tpu.memory_space<vmem>>, vector<1x128xf32>,
    } else {
    }
    %c0 = arith.constant 0 : index
    %c0_1 = arith.constant 0 : index
    %3 = vector.load %arg2[%c0, %c0_1] : memref<32x128xf32, #tpu.memory_space<vmem>>, vector<32x128xf32>
    %c0_2 = arith.constant 0 : index
    %c0_3 = arith.constant 0 : index
    %4 = vector.load %arg3[%c0_2, %c0_3] : memref<32x128xi8, #tpu.memory_space<vmem>>, vector<32x128xi8>
    %5 = arith.sitofp %4 : vector<32x128xi8> to vector<32x128xf32>
    %c0_4 = arith.constant 0 : index
    %c0_5 = arith.constant 0 : index
    %6 = vector.load %arg4[%c0_4, %c0_5] : memref<32x128xi8, #tpu.memory_space<vmem>>, vector<32x128xi8>
    %7 = arith.sitofp %6 : vector<32x128xi8> to vector<32x128xf32>
    %8 = math.absf %3 : vector<32x128xf32>
    %cst = arith.constant 0.000000e+00 : f32
    %9 = vector.broadcast %cst : f32 to vector<32x128xf32>
    %10 = arith.subf %9, %8 : vector<32x128xf32>
    %11 = math.exp %10 : vector<32x128xf32>
    %cst_6 = arith.constant 9.99999974E-5 : f32
    %12 = vector.broadcast %cst_6 : f32 to vector<32x128xf32>
    %13 = arith.cmpf ogt, %11, %12 : vector<32x128xf32>
    %cst_7 = arith.constant 1.000000e+00 : f32
    %14 = vector.broadcast %cst_7 : f32 to vector<32x128xf32>
    %15 = arith.addf %14, %11 : vector<32x128xf32>
    %16 = math.log %15 : vector<32x128xf32>
    %cst_8 = arith.constant 0.333333343 : f32
    %17 = vector.broadcast %cst_8 : f32 to vector<32x128xf32>
    %18 = arith.mulf %11, %17 : vector<32x128xf32>
    %cst_9 = arith.constant 5.000000e-01 : f32
    %19 = vector.broadcast %cst_9 : f32 to vector<32x128xf32>
    %20 = arith.subf %19, %18 : vector<32x128xf32>
    %21 = arith.mulf %11, %20 : vector<32x128xf32>
    %cst_10 = arith.constant 1.000000e+00 : f32
    %22 = vector.broadcast %cst_10 : f32 to vector<32x128xf32>
    %23 = arith.subf %22, %21 : vector<32x128xf32>
    %24 = arith.mulf %11, %23 : vector<32x128xf32>
    %25 = arith.select %13, %16, %24 : vector<32x128xi1>, vector<32x128xf32>
    %cst_11 = arith.constant 0.000000e+00 : f32
    %26 = vector.broadcast %cst_11 : f32 to vector<32x128xf32>
    %27 = arith.maximumf %3, %26 : vector<32x128xf32>
    %28 = arith.mulf %3, %5 : vector<32x128xf32>
    %29 = arith.subf %27, %28 : vector<32x128xf32>
    %30 = arith.addf %29, %25 : vector<32x128xf32>
    %c0_12 = arith.constant 0 : index
    %c0_13 = arith.constant 0 : index
    %31 = vector.load %arg11[%c0_12, %c0_13] : memref<1x128xf32, #tpu.memory_space<vmem>>, vector<1x128xf32>
    %32 = arith.mulf %30, %7 : vector<32x128xf32>
    %cst_14 = arith.constant dense<0.000000e+00> : vector<128xf32>
    %33 = vector.multi_reduction <add>, %32, %cst_14 [0] : vector<32x128xf32> to vector<128xf32>
    %34 = vector.shape_cast %33 : vector<128xf32> to vector<1x128xf32>
    %35 = arith.addf %31, %34 : vector<1x128xf32>
    %c0_15 = arith.constant 0 : index
    %c0_16 = arith.constant 0 : index
    %36 = vector.load %arg11[%c0_15, %c0_16] : memref<1x128xf32, #tpu.memory_space<vmem>>, vector<1x128xf32>
    tpu.vector_store %arg11[%c0_15, %c0_16], %35 {strides = array<i32>} : memref<1x128xf32, #tpu.memory_space<vmem>>, vector<1x128xf32>,
    %c0_17 = arith.constant 0 : index
    %c0_18 = arith.constant 0 : index
    %37 = vector.load %arg12[%c0_17, %c0_18] : memref<1x128xf32, #tpu.memory_space<vmem>>, vector<1x128xf32>
    %cst_19 = arith.constant dense<0.000000e+00> : vector<128xf32>
    %38 = vector.multi_reduction <add>, %7, %cst_19 [0] : vector<32x128xf32> to vector<128xf32>
    %39 = vector.shape_cast %38 : vector<128xf32> to vector<1x128xf32>
    %40 = arith.addf %37, %39 : vector<1x128xf32>
    %c0_20 = arith.constant 0 : index
    %c0_21 = arith.constant 0 : index
    %41 = vector.load %arg12[%c0_20, %c0_21] : memref<1x128xf32, #tpu.memory_space<vmem>>, vector<1x128xf32>
    tpu.vector_store %arg12[%c0_20, %c0_21], %40 {strides = array<i32>} : memref<1x128xf32, #tpu.memory_space<vmem>>, vector<1x128xf32>,
    %c0_22 = arith.constant 0 : index
    %c0_23 = arith.constant 0 : index
    %42 = vector.load %arg5[%c0_22, %c0_23] : memref<32x128xf32, #tpu.memory_space<vmem>>, vector<32x128xf32>
    %c0_24 = arith.constant 0 : index
    %c0_25 = arith.constant 0 : index
    %43 = vector.load %arg6[%c0_24, %c0_25] : memref<32x128xf32, #tpu.memory_space<vmem>>, vector<32x128xf32>
    %c0_26 = arith.constant 0 : index
    %c0_27 = arith.constant 0 : index
    %44 = vector.load %arg7[%c0_26, %c0_27] : memref<32x128xf32, #tpu.memory_space<vmem>>, vector<32x128xf32>
    %c0_28 = arith.constant 0 : index
    %c0_29 = arith.constant 0 : index
    %45 = vector.load %arg8[%c0_28, %c0_29] : memref<32x128xf32, #tpu.memory_space<vmem>>, vector<32x128xf32>
    %c0_30 = arith.constant 0 : index
    %c0_31 = arith.constant 0 : index
    %46 = vector.load %arg9[%c0_30, %c0_31] : memref<32x128xi8, #tpu.memory_space<vmem>>, vector<32x128xi8>
    %47 = arith.sitofp %46 : vector<32x128xi8> to vector<32x128xf32>
    %48 = arith.subf %45, %43 : vector<32x128xf32>
    %49 = math.exp %43 : vector<32x128xf32>
    %50 = arith.subf %42, %44 : vector<32x128xf32>
    %51 = arith.mulf %50, %50 : vector<32x128xf32>
    %52 = arith.addf %49, %51 : vector<32x128xf32>
    %cst_32 = arith.constant 0.000000e+00 : f32
    %53 = vector.broadcast %cst_32 : f32 to vector<32x128xf32>
    %54 = arith.subf %53, %45 : vector<32x128xf32>
    %55 = math.exp %54 : vector<32x128xf32>
    %56 = arith.mulf %52, %55 : vector<32x128xf32>
    %57 = arith.addf %48, %56 : vector<32x128xf32>
    %cst_33 = arith.constant 1.000000e+00 : f32
    %58 = vector.broadcast %cst_33 : f32 to vector<32x128xf32>
    %59 = arith.subf %57, %58 : vector<32x128xf32>
    %cst_34 = arith.constant 5.000000e-01 : f32
    %60 = vector.broadcast %cst_34 : f32 to vector<32x128xf32>
    %61 = arith.mulf %60, %59 : vector<32x128xf32>
    %c0_35 = arith.constant 0 : index
    %c0_36 = arith.constant 0 : index
    %62 = vector.load %arg13[%c0_35, %c0_36] : memref<1x128xf32, #tpu.memory_space<vmem>>, vector<1x128xf32>
    %63 = arith.mulf %61, %47 : vector<32x128xf32>
    %cst_37 = arith.constant dense<0.000000e+00> : vector<128xf32>
    %64 = vector.multi_reduction <add>, %63, %cst_37 [0] : vector<32x128xf32> to vector<128xf32>
    %65 = vector.shape_cast %64 : vector<128xf32> to vector<1x128xf32>
    %66 = arith.addf %62, %65 : vector<1x128xf32>
    %c0_38 = arith.constant 0 : index
    %c0_39 = arith.constant 0 : index
    %67 = vector.load %arg13[%c0_38, %c0_39] : memref<1x128xf32, #tpu.memory_space<vmem>>, vector<1x128xf32>
    tpu.vector_store %arg13[%c0_38, %c0_39], %66 {strides = array<i32>} : memref<1x128xf32, #tpu.memory_space<vmem>>, vector<1x128xf32>,
    %c0_40 = arith.constant 0 : index
    %c0_41 = arith.constant 0 : index
    %68 = vector.load %arg14[%c0_40, %c0_41] : memref<1x128xf32, #tpu.memory_space<vmem>>, vector<1x128xf32>
    %cst_42 = arith.constant dense<0.000000e+00> : vector<128xf32>
    %69 = vector.multi_reduction <add>, %47, %cst_42 [0] : vector<32x128xf32> to vector<128xf32>
    %70 = vector.shape_cast %69 : vector<128xf32> to vector<1x128xf32>
    %71 = arith.addf %68, %70 : vector<1x128xf32>
    %c0_43 = arith.constant 0 : index
    %c0_44 = arith.constant 0 : index
    %72 = vector.load %arg14[%c0_43, %c0_44] : memref<1x128xf32, #tpu.memory_space<vmem>>, vector<1x128xf32>
    tpu.vector_store %arg14[%c0_43, %c0_44], %71 {strides = array<i32>} : memref<1x128xf32, #tpu.memory_space<vmem>>, vector<1x128xf32>,
    %c0_i32_45 = arith.constant 0 : i32
    %73 = arith.cmpi eq, %arg1, %c0_i32_45 : i32
    %74 = arith.extui %73 : i1 to i32
    %c0_i32_46 = arith.constant 0 : i32
    %75 = arith.cmpi ne, %74, %c0_i32_46 : i32
    scf.if %75 {
      %c0_47 = arith.constant 0 : index
      %c0_48 = arith.constant 0 : index
      %76 = vector.load %arg11[%c0_47, %c0_48] : memref<1x128xf32, #tpu.memory_space<vmem>>, vector<1x128xf32>
      %c0_49 = arith.constant 0 : index
      %c0_50 = arith.constant 0 : index
      %77 = vector.load %arg10[%c0_49, %c0_50] : memref<8x128xf32, #tpu.memory_space<vmem>>, vector<1x128xf32>
      tpu.vector_store %arg10[%c0_49, %c0_50], %76 {strides = array<i32>} : memref<8x128xf32, #tpu.memory_space<vmem>>, vector<1x128xf32>,
      %c0_51 = arith.constant 0 : index
      %c0_52 = arith.constant 0 : index
      %78 = vector.load %arg12[%c0_51, %c0_52] : memref<1x128xf32, #tpu.memory_space<vmem>>, vector<1x128xf32>
      %c1 = arith.constant 1 : index
      %c0_53 = arith.constant 0 : index
      %79 = vector.load %arg10[%c1, %c0_53] : memref<8x128xf32, #tpu.memory_space<vmem>>, vector<1x128xf32>
      tpu.vector_store %arg10[%c1, %c0_53], %78 {strides = array<i32>} : memref<8x128xf32, #tpu.memory_space<vmem>>, vector<1x128xf32>,
      %c0_54 = arith.constant 0 : index
      %c0_55 = arith.constant 0 : index
      %80 = vector.load %arg13[%c0_54, %c0_55] : memref<1x128xf32, #tpu.memory_space<vmem>>, vector<1x128xf32>
      %c2 = arith.constant 2 : index
      %c0_56 = arith.constant 0 : index
      %81 = vector.load %arg10[%c2, %c0_56] : memref<8x128xf32, #tpu.memory_space<vmem>>, vector<1x128xf32>
      tpu.vector_store %arg10[%c2, %c0_56], %80 {strides = array<i32>} : memref<8x128xf32, #tpu.memory_space<vmem>>, vector<1x128xf32>,
      %c0_57 = arith.constant 0 : index
      %c0_58 = arith.constant 0 : index
      %82 = vector.load %arg14[%c0_57, %c0_58] : memref<1x128xf32, #tpu.memory_space<vmem>>, vector<1x128xf32>
      %c3 = arith.constant 3 : index
      %c0_59 = arith.constant 0 : index
      %83 = vector.load %arg10[%c3, %c0_59] : memref<8x128xf32, #tpu.memory_space<vmem>>, vector<1x128xf32>
      tpu.vector_store %arg10[%c3, %c0_59], %82 {strides = array<i32>} : memref<8x128xf32, #tpu.memory_space<vmem>>, vector<1x128xf32>,
    } else {
    }
    return
  }
  func.func @transform_0(%arg0: i32, %arg1: i32) -> (i32, i32) {
    %c1_i32 = arith.constant 1 : i32
    %0 = arith.muli %arg0, %c1_i32 : i32
    %1 = arith.addi %0, %arg1 : i32
    %c0_i32 = arith.constant 0 : i32
    %c0_i32_0 = arith.constant 0 : i32
    return %1, %c0_i32 : i32, i32
  }
  func.func @transform_1(%arg0: i32, %arg1: i32) -> (i32, i32) {
    %c1_i32 = arith.constant 1 : i32
    %0 = arith.muli %arg0, %c1_i32 : i32
    %1 = arith.addi %0, %arg1 : i32
    %c0_i32 = arith.constant 0 : i32
    %c0_i32_0 = arith.constant 0 : i32
    return %1, %c0_i32 : i32, i32
  }
  func.func @transform_2(%arg0: i32, %arg1: i32) -> (i32, i32) {
    %c1_i32 = arith.constant 1 : i32
    %0 = arith.muli %arg0, %c1_i32 : i32
    %1 = arith.addi %0, %arg1 : i32
    %c0_i32 = arith.constant 0 : i32
    %c0_i32_0 = arith.constant 0 : i32
    return %1, %c0_i32 : i32, i32
  }
  func.func @transform_3(%arg0: i32, %arg1: i32) -> (i32, i32) {
    %c1_i32 = arith.constant 1 : i32
    %0 = arith.muli %arg0, %c1_i32 : i32
    %1 = arith.addi %0, %arg1 : i32
    %c0_i32 = arith.constant 0 : i32
    %c0_i32_0 = arith.constant 0 : i32
    return %1, %c0_i32 : i32, i32
  }
  func.func @transform_4(%arg0: i32, %arg1: i32) -> (i32, i32) {
    %c1_i32 = arith.constant 1 : i32
    %0 = arith.muli %arg0, %c1_i32 : i32
    %1 = arith.addi %0, %arg1 : i32
    %c0_i32 = arith.constant 0 : i32
    %c0_i32_0 = arith.constant 0 : i32
    return %1, %c0_i32 : i32, i32
  }
  func.func @transform_5(%arg0: i32, %arg1: i32) -> (i32, i32) {
    %c1_i32 = arith.constant 1 : i32
    %0 = arith.muli %arg0, %c1_i32 : i32
    %1 = arith.addi %0, %arg1 : i32
    %c0_i32 = arith.constant 0 : i32
    %c0_i32_0 = arith.constant 0 : i32
    return %1, %c0_i32 : i32, i32
  }
  func.func @transform_6(%arg0: i32, %arg1: i32) -> (i32, i32) {
    %c1_i32 = arith.constant 1 : i32
    %0 = arith.muli %arg0, %c1_i32 : i32
    %1 = arith.addi %0, %arg1 : i32
    %c0_i32 = arith.constant 0 : i32
    %c0_i32_0 = arith.constant 0 : i32
    return %1, %c0_i32 : i32, i32
  }
  func.func @transform_7(%arg0: i32, %arg1: i32) -> (i32, i32) {
    %c1_i32 = arith.constant 1 : i32
    %0 = arith.muli %arg0, %c1_i32 : i32
    %1 = arith.addi %0, %arg1 : i32
    %c0_i32 = arith.constant 0 : i32
    %c0_i32_0 = arith.constant 0 : i32
    return %1, %c0_i32 : i32, i32
  }
  func.func @transform_8(%arg0: i32, %arg1: i32) -> (i32, i32) {
    %c0_i32 = arith.constant 0 : i32
    %c0_i32_0 = arith.constant 0 : i32
    return %arg0, %c0_i32 : i32, i32
  }
}

</mosaic_0001>

<bundles_post_ra>
// kernel: _elbo_pallas.1
= control target key start
LH: loop header
LB: loop body
LE: loop exit
PB: predicated region body
PF: predicated region fallthrough
CT: control target
= control target key end

     0   :  { %s1057_s27 = smov 0   ;;  %s1059_s28 = smov 0   ;;  %s1296_s0 = inlined_call_operand.vmem [shape: f32[64,128], index: 0, kind: input, shape index: {}]   ;;  %s1297_s1 = inlined_call_operand.vmem [shape: s8[64,128], index: 1, kind: input, shape index: {}]   ;;  %s1298_s2 = inlined_call_operand.vmem [shape: s8[64,128], index: 2, kind: input, shape index: {}]   ;;  %s1299_s3 = inlined_call_operand.vmem [shape: f32[64,128], index: 3, kind: input, shape index: {}]   ;;  %s1300_s4 = inlined_call_operand.vmem [shape: f32[64,128], index: 4, kind: input, shape index: {}]   ;;  %s1301_s5 = inlined_call_operand.vmem [shape: f32[64,128], index: 5, kind: input, shape index: {}]   ;;  %s1302_s6 = inlined_call_operand.vmem [shape: f32[64,128], index: 6, kind: input, shape index: {}]   ;;  %s1303_s7 = inlined_call_operand.vmem [shape: s8[64,128], index: 7, kind: input, shape index: {}]   ;;  %s1304_s8 = inlined_call_operand.vmem [shape: f32[16,128], index: 8, kind: output, shape index: {}]  }
   0x1   :  { %s1061_s29 = smov 0  }
   0x2 LB: > { %s30_s30 = sadd.s32 1, %s1005_s28  ;;  %p909_p0 = scmp.ge.s32.totalorder %s1009_s29, 1  ;;  %s1009_s29 = sphi %s1061_s29, %s18_s29   ;;  %s1005_s28 = sphi %s1059_s28, %s1306_s28   ;;  %s1001_s27 = sphi %s1057_s27, %s1305_s27  }
   0x3   : > { %p32_p1 = scmp.ge.s32.totalorder %s30_s30, 2  ;;  %p378_p2 = scmp.lt.s32.totalorder %s1009_s29, 3 }
   0x5   : > { %s1308_s30 = smov (%p32_p1, %s30_s30), 0  ;;  %p379_p3 = pnand %p909_p0, %p378_p2 }
   0x6   : > { %s910_s9 = sshll.u32 (!%p379_p3), %s1001_s27, 2  ;;  %p460_p4 = scmp.lt.s32.totalorder (!%p379_p3), %s1001_s27, 1 }
   0x7   : > { %382 = sbr.rel (%p379_p3) target bundleno = 95 (0x5f), region = 52  ;;  %p453_p5 = scmp.lt.s32.totalorder (!%p379_p3), %s910_s9, 7 }
   0xc   : > { %v1011_v0 = vmov 0.0   ;;  %s1310_s27 = smov (!%p460_p4, %s1001_s27), 1  ;;  %s1312_s9 = smov (!%p453_p5, %s910_s9), 7 }
   0xd   : > { %518 = vst [vmem:[#allocation2] sm:$0x1] %v1011_v0  ;;  %519 = vst [vmem:[#allocation3] sm:$0x1] %v1011_v0  ;;  %s1075_s10 = sshll.u32 %s1310_s27, 3  ;;  %s1077_s11 = sshll.u32 %s1312_s9, 3 }
   0xe   : > { %520 = vst [vmem:[#allocation4] sm:$0x1] %v1011_v0  ;;  %521 = vst [vmem:[#allocation5] sm:$0x1] %v1011_v0  ;;  %s463_s14 = scalar_lea.vmem %s1297_s1, %s1075_s10  ;;  %s456_s17 = scalar_lea.vmem %s1296_s0, %s1077_s11 }
   0xf   : > { %s469_s20 = scalar_lea.vmem %s1298_s2, %s1075_s10  ;;  %v1091_v1 = vld [vmem:[%s456_s17] sm:$0xff]  ;;  %v1093_v2 = vld [vmem:[%s456_s17 + $0x8] sm:$0xff]  ;;  %v1095_v3 = vld [vmem:[%s456_s17 + $0x10] sm:$0xff]  ;;  %s1105_s23 = scalar_lea.vmem %s1304_s8, %s1075_s10 }
  0x10   : > { %v1097_v4 = vld [vmem:[%s456_s17 + $0x18] sm:$0xff]  ;;  %v535_v5 = vld [vmem:[%s469_s20] sm:$0xff]  ;;  %v544_v6 = vand.u32 2147483647, %v1091_v1  ;;  %v545_v7 = vand.u32 2147483647, %v1093_v2  ;;  %517 = vst [vmem:[%s1105_s23] sm:$0xff] %v1011_v0  ;;  %s484_s26 = scalar_lea.vmem %s1300_s4, %s1077_s11  ;;  %s507_s12 = scalar_lea.vmem %s1303_s7, %s1075_s10 }
  0x11   : > { %v526_v8 = vld [vmem:[%s463_s14] sm:$0xff]  ;;  %v536_v9 = vunpack.c.0.s8 %v535_v5  ;;  %v537_v10 = vunpack.c.1.s8 %v535_v5  ;;  %v546_v11 = vand.u32 2147483647, %v1095_v3  ;;  %v547_v12 = vand.u32 2147483647, %v1097_v4  ;;  %s1130_s15 = scalar_lea.vmem %s1302_s6, %s1077_s11  ;;  %v1137_v36 = vld [vmem:[%s484_s26 + $0x8] sm:$0xff]  ;;  %s1158_s17 = scalar_lea.vmem %s1299_s3, %s1077_s11 }
  0x12   : > { %v548_v13 = vsub.f32 0.0, %v544_v6  ;;  %v549_v14 = vsub.f32 0.0, %v545_v7  ;;  %v527_v15 = vunpack.c.0.s8 %v526_v8  ;;  %v538_v16 = vunpack.c.2.s8 %v535_v5  ;;  %v1135_v35 = vld [vmem:[%s484_s26] sm:$0xff]  ;;  %v1139_v39 = vld [vmem:[%s484_s26 + $0x10] sm:$0xff]  ;;  %v1147_v45 = vld [vmem:[%s484_s26 + $0x18] sm:$0xff]  ;;  %s1164_s20 = scalar_lea.vmem %s1301_s5, %s1077_s11 }
  0x13   : > { %v550_v17 = vsub.f32 0.0, %v546_v11  ;;  %v551_v18 = vsub.f32 0.0, %v547_v12  ;;  %v528_v21 = vunpack.c.1.s8 %v526_v8  ;;  %v539_v22 = vunpack.c.3.s8 %v535_v5  ;;  %v1141_v40 = vld [vmem:[%s507_s12] sm:$0xff]  ;;  %v1174_v55 = vld [vmem:[%s1130_s15 + $0x8] sm:$0xff]  ;;  %v1193_v5 = vld [vmem:[%s1130_s15 + $0x18] sm:$0xff] }
  0x14   : > { %v552_v19 = vmul.f32 1.442695, %v548_v13  ;;  %v554_v20 = vmul.f32 1.442695, %v549_v14  ;;  %v1110_v23 = vcvt.s32.f32 %v536_v9  ;;  %v1112_v24 = vcvt.s32.f32 %v537_v10  ;;  %v1150_v46 = vld [vmem:[%s1130_s15] sm:$0xff] }
  0x15   : > { %v556_v25 = vmul.f32 1.442695, %v550_v17  ;;  %v558_v26 = vmul.f32 1.442695, %v551_v18  ;;  %v529_v27 = vunpack.c.2.s8 %v526_v8  ;;  %v530_v28 = vunpack.c.3.s8 %v526_v8  ;;  %v644_v63 = vld [vmem:[%s1158_s17] sm:$0xff] }
  0x16   : > { %955 = vpow2.f32 %v552_v19  ;;  %v531_v29 = vcvt.s32.f32 %v527_v15  ;;  %v1118_v30 = vcvt.s32.f32 %v538_v16  ;;  %v633_v31 = vadd.f32 %v1112_v24, %v1110_v23  ;;  %v652_v0 = vld [vmem:[%s1164_s20] sm:$0xff] }
  0x17   : > { %957 = vpow2.f32 %v554_v20  ;;  %v532_v32 = vcvt.s32.f32 %v528_v21  ;;  %v1132_v33 = vcvt.s32.f32 %v539_v22  ;;  %v533_v37 = vcvt.s32.f32 %v529_v27 }
  0x18   : > { %959 = vpow2.f32 %v556_v25  ;;  %v634_v34 = vadd.f32 %v633_v31, %v1118_v30  ;;  %v534_v38 = vcvt.s32.f32 %v530_v28  ;;  %v600_v41 = vmax.f32 %v1091_v1, 0.0 }
  0x19   : > { %961 = vpow2.f32 %v558_v26  ;;  %v601_v42 = vmax.f32 %v1093_v2, 0.0  ;;  %v604_v43 = vmul.f32 %v531_v29, %v1091_v1  ;;  %v602_v47 = vmax.f32 %v1095_v3, 0.0  ;;  %v1190_v1 = vld [vmem:[%s1130_s15 + $0x10] sm:$0xff] }
  0x1a   : > { %v635_v44 = vadd.f32 %v634_v34, %v1132_v33  ;;  %v603_v48 = vmax.f32 %v1097_v4, 0.0  ;;  %v673_v49 = vmul.f32 1.442695, %v1135_v35  ;;  %v675_v50 = vmul.f32 1.442695, %v1137_v36 }
  0x1b   : > { %v1169_v51 = vmul.f32 %v532_v32, %v1093_v2  ;;  %v661_v53 = vunpack.c.0.s8 %v1141_v40  ;;  %v677_v54 = vmul.f32 1.442695, %v1139_v39  ;;  %v662_v56 = vunpack.c.1.s8 %v1141_v40 }
  0x1c   : > { %v636_v52 = vrot.slane %v635_v44, 4  ;;  %963 = vpow2.f32 %v673_v49  ;;  %v679_v57 = vmul.f32 1.442695, %v1147_v45  ;;  %v693_v58 = vsub.f32 0.0, %v1150_v46  ;;  %v645_v49 = vld [vmem:[%s1158_s17 + $0x8] sm:$0xff] }
  0x1d   : > { %v1180_v59 = vmul.f32 %v533_v37, %v1095_v3  ;;  %v1183_v60 = vmul.f32 %v534_v38, %v1097_v4  ;;  %v1185_v61 = vsub.f32 %v600_v41, %v604_v43  ;;  %v663_v6 = vunpack.c.2.s8 %v1141_v40 }
  0x1e   : > { %v637_v62 = vadd.f32 %v636_v52, %v635_v44  ;;  %v664_v7 = vunpack.c.3.s8 %v1141_v40  ;;  %v669_v8 = vsub.f32 %v1150_v46, %v1135_v35  ;;  %965 = vpow2.f32 %v675_v50  ;;  %v653_v50 = vld [vmem:[%s1164_s20 + $0x8] sm:$0xff] }
  0x1f   : > { %v1199_v10 = vcvt.s32.f32 %v661_v53  ;;  %967 = vpow2.f32 %v677_v54  ;;  %v694_v11 = vsub.f32 0.0, %v1174_v55  ;;  %v1204_v13 = vcvt.s32.f32 %v662_v56  ;;  %v632_v54 = vld [vmem:[#allocation3] sm:$0x1]  ;;  %v646_v56 = vld [vmem:[%s1158_s17 + $0x10] sm:$0xff] }
  0x20   : > { %v638_v9 = vrot.slane %v637_v62, 2  ;;  %969 = vpow2.f32 %v679_v57  ;;  %v681_v14 = vsub.f32 %v644_v63, %v652_v0  ;;  %v697_v15 = vmul.f32 1.442695, %v693_v58  ;;  %v654_v57 = vld [vmem:[%s1164_s20 + $0x10] sm:$0xff] }
  0x21   : > { %v695_v19 = vsub.f32 0.0, %v1190_v1  ;;  %v696_v20 = vsub.f32 0.0, %v1193_v5  ;;  %v699_v31 = vmul.f32 1.442695, %v694_v11  ;;  %v738_v37 = vadd.f32 %v1204_v13, %v1199_v10  ;;  %v655_v11 = vld [vmem:[%s1164_s20 + $0x18] sm:$0xff] }
  0x22   : > { %v639_v26 = vadd.f32 %v638_v9, %v637_v62  ;;  %971 = vpow2.f32 %v697_v15  ;;  %v1229_v58 = vcvt.s32.f32 %v663_v6  ;;  %v685_v62 = vmul.f32 %v681_v14, %v681_v14  ;;  %v647_v9 = vld [vmem:[%s1158_s17 + $0x18] sm:$0xff] }
  0x23   : > { %v1202_v12 = vpop.eup %955  ;;  %v701_v52 = vmul.f32 1.442695, %v695_v19  ;;  %v703_v15 = vmul.f32 1.442695, %v696_v20  ;;  %v1237_v6 = vcvt.s32.f32 %v664_v7  ;;  %v683_v14 = vsub.f32 %v646_v56, %v654_v57 }
  0x24   : > { %v1206_v16 = vpop.eup %957  ;;  %v564_v17 = vadd.f32 1.0, %v1202_v12  ;;  %v576_v18 = vmul.f32 0.33333334, %v1202_v12  ;;  %v640_v44 = vrot.slane %v639_v26, 1  ;;  %v610_v20 = vsub.f32 %v602_v47, %v1180_v59 }
  0x25   : > { %v1212_v21 = vpop.eup %959  ;;  %v565_v22 = vadd.f32 1.0, %v1206_v16  ;;  %v577_v25 = vmul.f32 0.33333334, %v1206_v16  ;;  %v611_v7 = vsub.f32 %v603_v48, %v1183_v60  ;;  %v670_v2 = vsub.f32 %v1174_v55, %v1137_v36 }
  0x26   : > { %v1216_v27 = vpop.eup %961  ;;  %v566_v28 = vadd.f32 1.0, %v1212_v21  ;;  %973 = vlog2.f32 %v564_v17  ;;  %v578_v29 = vmul.f32 0.33333334, %v1212_v21  ;;  %v580_v38 = vsub.f32 0.5, %v576_v18 }
  0x27   : > { %v567_v32 = vadd.f32 1.0, %v1216_v27  ;;  %975 = vlog2.f32 %v565_v22  ;;  %v579_v34 = vmul.f32 0.33333334, %v1216_v27  ;;  %v581_v40 = vsub.f32 0.5, %v577_v25 }
  0x28   : > { %977 = vlog2.f32 %v566_v28  ;;  %v582_v41 = vsub.f32 0.5, %v578_v29  ;;  %v584_v53 = vmul.f32 %v1202_v12, %v580_v38  ;;  %v641_v0 = vadd.f32 %v640_v44, %v639_v26 }
  0x29   : > { %979 = vlog2.f32 %v567_v32  ;;  %v583_v43 = vsub.f32 0.5, %v579_v34  ;;  %v585_v63 = vmul.f32 %v1206_v16, %v581_v40  ;;  %v964_v17 = vpop.eup %963  ;;  %v682_v22 = vsub.f32 %v645_v49, %v653_v50 }
  0x2a   : > { %981 = vpow2.f32 %v699_v31  ;;  %v586_v18 = vmul.f32 %v1212_v21, %v582_v41  ;;  %v739_v25 = vadd.f32 %v738_v37, %v1229_v58  ;;  %v642_v28 = vadd.f32 %v641_v0, %v632_v54 }
  0x2b   : > { %983 = vpow2.f32 %v701_v52  ;;  %v587_v19 = vmul.f32 %v1216_v27, %v583_v43  ;;  %v966_v29 = vpop.eup %965  ;;  %v588_v31 = vsub.f32 1.0, %v584_v53  ;;  %v609_v26 = vsub.f32 %v601_v42, %v1169_v51 }
  0x2c   : > { %985 = vpow2.f32 %v703_v15  ;;  %v684_v32 = vsub.f32 %v647_v9, %v655_v11  ;;  %v968_v34 = vpop.eup %967  ;;  %v589_v38 = vsub.f32 1.0, %v585_v63  ;;  %643 = vst [vmem:[#allocation3] sm:$0x1] %v642_v28  ;;  %v689_v37 = vadd.f32 %v964_v17, %v685_v62 }
  0x2d   : > { %v740_v40 = vadd.f32 %v739_v25, %v1237_v6  ;;  %v970_v41 = vpop.eup %969  ;;  %v590_v43 = vsub.f32 1.0, %v586_v18  ;;  %v591_v44 = vsub.f32 1.0, %v587_v19  ;;  %v686_v42 = vmul.f32 %v682_v22, %v682_v22 }
  0x2e   : > { %v671_v3 = vsub.f32 %v1190_v1, %v1139_v39  ;;  %v672_v47 = vsub.f32 %v1193_v5, %v1147_v45  ;;  %v687_v51 = vmul.f32 %v683_v14, %v683_v14  ;;  %vm560_vm0 = vcmp.gt.f32.partialorder %v1202_v12, 0.0001 }
  0x2f   : > { %v741_v4 = vrot.slane %v740_v40, 4  ;;  %v972_v48 = vpop.eup %971  ;;  %vm561_vm1 = vcmp.gt.f32.partialorder %v1206_v16, 0.0001  ;;  %v592_v59 = vmul.f32 %v1202_v12, %v588_v31  ;;  %v688_v60 = vmul.f32 %v684_v32, %v684_v32 }
  0x30   : > { %vm562_vm2 = vcmp.gt.f32.partialorder %v1212_v21, 0.0001  ;;  %v593_v36 = vmul.f32 %v1206_v16, %v589_v38  ;;  %v705_v55 = vmul.f32 %v972_v48, %v689_v37  ;;  %v594_v45 = vmul.f32 %v1212_v21, %v590_v43 }
  0x31   : > { %v742_v39 = vadd.f32 %v741_v4, %v740_v40  ;;  %v595_v5 = vmul.f32 %v1216_v27, %v591_v44  ;;  %v690_v52 = vadd.f32 %v966_v29, %v686_v42  ;;  %v691_v56 = vadd.f32 %v968_v34, %v687_v51  ;;  %v737_v42 = vld [vmem:[#allocation5] sm:$0x1] }
  0x32   : > { %v709_v57 = vadd.f32 %v705_v55, %v669_v8  ;;  %vm563_vm3 = vcmp.gt.f32.partialorder %v1216_v27, 0.0001  ;;  %v692_v11 = vadd.f32 %v970_v41, %v688_v60 }
  0x33   : > { %v974_v49 = vpop.eup %973  ;;  %v743_v62 = vrot.slane %v742_v39, 2  ;;  %v754_v15 = vld [vmem:[#allocation3] sm:$0x1] }
  0x34   : > { %v976_v1 = vpop.eup %975  ;;  %v569_v50 = vmul.f32 0.6931472, %v974_v49  ;;  %v924_v25 = vadd.f32 -1.0, %v709_v57  ;;  %755 = vst [vmem:[%s1105_s23 + $0x1] sm:$0x1] %v754_v15 }
  0x35   : > { %v978_v53 = vpop.eup %977  ;;  %v571_v54 = vmul.f32 0.6931472, %v976_v1  ;;  %v744_v14 = vadd.f32 %v743_v62, %v742_v39 }
  0x36   : > { %v980_v63 = vpop.eup %979  ;;  %v573_v0 = vmul.f32 0.6931472, %v978_v53  ;;  %v596_v9 = vsel %vm560_vm0, %v569_v50, %v592_v59  ;;  %v717_v37 = vmul.f32 0.5, %v924_v25  ;;  %v616_v53 = vld [vmem:[#allocation2] sm:$0x1] }
  0x37   : > { %v982_v17 = vpop.eup %981  ;;  %v575_v18 = vmul.f32 0.6931472, %v980_v63  ;;  %v597_v19 = vsel %vm561_vm1, %v571_v54, %v593_v36  ;;  %v612_v22 = vadd.f32 %v1185_v61, %v596_v9 }
  0x38   : > { %v984_v35 = vpop.eup %983  ;;  %v598_v46 = vsel %vm562_vm2, %v573_v0, %v594_v45  ;;  %v613_v8 = vadd.f32 %v609_v26, %v597_v19  ;;  %v706_v28 = vmul.f32 %v982_v17, %v690_v52  ;;  %v745_v26 = vrot.slane %v744_v14, 1 }
  0x39   : > { %v599_v12 = vsel %vm563_vm3, %v575_v18, %v595_v5  ;;  %v614_v29 = vadd.f32 %v610_v20, %v598_v46  ;;  %v617_v31 = vmul.f32 %v612_v22, %v1110_v23  ;;  %v707_v32 = vmul.f32 %v984_v35, %v691_v56  ;;  %v986_v16 = vpop.eup %985 }
  0x3a   : > { %v615_v34 = vadd.f32 %v611_v7, %v599_v12  ;;  %v618_v61 = vmul.f32 %v613_v8, %v1112_v24  ;;  %v710_v38 = vadd.f32 %v706_v28, %v670_v2  ;;  %v708_v21 = vmul.f32 %v986_v16, %v692_v11 }
  0x3b   : > { %v619_v40 = vmul.f32 %v614_v29, %v1118_v30  ;;  %v711_v41 = vadd.f32 %v707_v32, %v671_v3  ;;  %v746_v23 = vadd.f32 %v745_v26, %v744_v14  ;;  %v722_v7 = vmul.f32 %v717_v37, %v1199_v10 }
  0x3c   : > { %v620_v43 = vmul.f32 %v615_v34, %v1132_v33  ;;  %v621_v44 = vadd.f32 %v618_v61, %v617_v31  ;;  %v925_v27 = vadd.f32 -1.0, %v710_v38  ;;  %v712_v20 = vadd.f32 %v708_v21, %v672_v47 }
  0x3d   : > { %v926_v51 = vadd.f32 -1.0, %v711_v41  ;;  %v747_v59 = vadd.f32 %v746_v23, %v737_v42 }
  0x3e   : > { %v622_v4 = vadd.f32 %v621_v44, %v619_v40  ;;  %v718_v48 = vmul.f32 0.5, %v925_v27  ;;  %v927_v24 = vadd.f32 -1.0, %v712_v20 }
  0x3f   : > { %v719_v2 = vmul.f32 0.5, %v926_v51  ;;  %748 = vst [vmem:[#allocation5] sm:$0x1] %v747_v59 }
  0x40   : > { %v623_v30 = vadd.f32 %v622_v4, %v620_v43  ;;  %v723_v3 = vmul.f32 %v718_v48, %v1204_v13  ;;  %v720_v60 = vmul.f32 0.5, %v927_v24 }
  0x41   : > { %v724_v33 = vmul.f32 %v719_v2, %v1229_v58 }
  0x42   : > { %v624_v49 = vrot.slane %v623_v30, 4  ;;  %v726_v36 = vadd.f32 %v723_v3, %v722_v7  ;;  %v725_v47 = vmul.f32 %v720_v60, %v1237_v6  ;;  %v721_v6 = vld [vmem:[#allocation4] sm:$0x1] }
  0x44   : > { %v625_v55 = vadd.f32 %v624_v49, %v623_v30  ;;  %v727_v39 = vadd.f32 %v726_v36, %v724_v33 }
  0x46   : > { %v626_v1 = vrot.slane %v625_v55, 2  ;;  %v728_v50 = vadd.f32 %v727_v39, %v725_v47  ;;  %v758_v5 = vld [vmem:[#allocation5] sm:$0x1] }
  0x47   : > { %759 = vst [vmem:[%s1105_s23 + $0x3] sm:$0x1] %v758_v5 }
  0x48   : > { %v627_v10 = vadd.f32 %v626_v1, %v625_v55  ;;  %v729_v45 = vrot.slane %v728_v50, 4 }
  0x4a   : > { %v628_v52 = vrot.slane %v627_v10, 1  ;;  %v730_v13 = vadd.f32 %v729_v45, %v728_v50 }
  0x4c   : > { %v629_v54 = vadd.f32 %v628_v52, %v627_v10  ;;  %v731_v58 = vrot.slane %v730_v13, 2 }
  0x4e   : > { %v630_v56 = vadd.f32 %v629_v54, %v616_v53  ;;  %v732_v57 = vadd.f32 %v731_v58, %v730_v13 }
  0x50   : > { %631 = vst [vmem:[#allocation2] sm:$0x1] %v630_v56  ;;  %v733_v62 = vrot.slane %v732_v57, 1 }
  0x52   : > { %v734_v63 = vadd.f32 %v733_v62, %v732_v57 }
  0x54   : > { %v735_v0 = vadd.f32 %v734_v63, %v721_v6 }
  0x56   : > { %736 = vst [vmem:[#allocation4] sm:$0x1] %v735_v0 }
  0x57   : > { %v752_v9 = vld [vmem:[#allocation2] sm:$0x1] }
  0x58   : > { %753 = vst [vmem:[%s1105_s23] sm:$0x1] %v752_v9 }
  0x5d   : > { %v756_v11 = vld [vmem:[#allocation4] sm:$0x1] }
  0x5e   : > { %757 = vst [vmem:[%s1105_s23 + $0x2] sm:$0x1] %v756_v11 }
  0x5f PF: > { %s18_s29 = sadd.s32 1, %s1009_s29   ;;  %s1305_s27 = smov %s1005_s28 }
  0x60   : > { %p15_p6 = scmp.ge.s32.totalorder %s18_s29, 4   ;;  %s1306_s28 = smov %s1308_s30 }
  0x62   :  { %17 = sbr.rel (!%p15_p6) target bundleno = 2 (0x2), region = 111 }

</bundles_post_ra>
